<compile_context>
chip_gen: v7x
topology: tpu7x:2x2x1
jax: 0.10.0
libtpu: 0.0.40
codegen_flags: <defaults>
</compile_context>

<pallas_src>
import math

import jax
import jax.numpy as jnp
from jax.experimental import pallas as pl
from jax.experimental.pallas import tpu as pltpu


def _round_up(v, m):
    return ((v + m - 1) // m) * m


# ---------------------------------------------------------------------------
# Kernel 1: per-class inverse L2 norm of W rows (hoisted out of the batch loop)
# ---------------------------------------------------------------------------
def _invnorm_kernel(w_ref, inv_ref):
    w = w_ref[...].astype(jnp.float32)                       # (tn, D)
    ssq = jnp.sum(w * w, axis=1, keepdims=True)              # (tn, 1)
    # F.normalize clamp: w / max(||w||, 1e-12) == w * rsqrt(max(||w||^2, 1e-24))
    # rsqrt runs on the EUP slot (cheap) instead of a VPU divide.
    inv_ref[...] = jax.lax.rsqrt(jnp.maximum(ssq, 1e-24))


# ---------------------------------------------------------------------------
# Kernel 2a: training tile -- MXU matmul + column scale + fused statistics
# ---------------------------------------------------------------------------
def _make_train_kernel(tn, num_classes, padded_classes):
    mask_pad = padded_classes != num_classes

    def kernel(x_ref, w_ref, inv_ref, y_ref, s_ref,
               logits_ref, bexp_ref, tgt_ref):
        j = pl.program_id(1)                                 # class-tile index

        @pl.when(j == 0)
        def _init():
            bexp_ref[...] = jnp.zeros_like(bexp_ref)
            tgt_ref[...] = jnp.zeros_like(tgt_ref)

        # (tm, D) @ (tn, D)^T, f32 accumulation, operands in caller's dtype.
        acc = jax.lax.dot_general(
            x_ref[...], w_ref[...], (((1,), (1,)), ((), ())),
            preferred_element_type=jnp.float32)              # (tm, tn) f32
        # Column scale by 1/||W_c||: identical to x @ normalize(W)^T, but the
        # normalization cost here is O(tm*tn) instead of O(tn*D) per tile.
        logits = acc * inv_ref[...]                          # (1, tn) broadcast
        logits_ref[...] = logits.astype(logits_ref.dtype)

        s_old = s_ref[0, 0]
        cls = j * tn + jax.lax.broadcasted_iota(jnp.int32, logits.shape, 1)
        is_tgt = cls == y_ref[...]                           # (tm, tn) mask

        e = jnp.exp(s_old * logits)                          # f32, EUP slot
        if mask_pad:                                         # drop padded classes
            drop = jnp.logical_or(is_tgt, cls >= num_classes)
        else:
            drop = is_tgt
        bexp_ref[...] += jnp.sum(jnp.where(drop, 0.0, e), axis=1, keepdims=True)
        tgt_ref[...] += jnp.sum(jnp.where(is_tgt, logits, 0.0),
                                axis=1, keepdims=True)

    return kernel


# ---------------------------------------------------------------------------
# Kernel 2b: inference tile -- MXU matmul + column scale only
# ---------------------------------------------------------------------------
def _infer_kernel(x_ref, w_ref, inv_ref, logits_ref):
    acc = jax.lax.dot_general(
        x_ref[...], w_ref[...], (((1,), (1,)), ((), ())),
        preferred_element_type=jnp.float32)
    logits_ref[...] = (acc * inv_ref[...]).astype(logits_ref.dtype)


def _compute_inv_norms(W_pad, tn, D):
    Cp = W_pad.shape[0]
    inv_col = pl.pallas_call(
        _invnorm_kernel,
        out_shape=jax.ShapeDtypeStruct((Cp, 1), jnp.float32),
        grid=(Cp // tn,),
        in_specs=[pl.BlockSpec((tn, D), lambda j: (j, 0))],
        out_specs=pl.BlockSpec((tn, 1), lambda j: (j, 0)),
        compiler_params=pltpu.CompilerParams(
            dimension_semantics=("parallel",)),
    )(W_pad)
    # (Cp, 1) -> (1, Cp): contiguous no-op reshape; gives the main kernel a
    # lane-dense row to broadcast over logits columns.
    return inv_col.reshape(1, Cp)


def adacos_forward(x, W, s, y=None, *, tm=256, tn=512,
                   compute_dtype=None, vmem_limit_bytes=None):
    """AdaCos forward.  Returns (output, new_s); matches AdaCos.forward.

    x: (B, D), W: (C, D), s: scalar, y: optional (B,) int labels.
    compute_dtype: dtype for the MXU operands (default x.dtype; pass
        jnp.bfloat16 in production -- norms and stats stay f32).
    tm, tn: batch / class tile sizes.  v7x (64 MiB VMEM): ~256/512 in f32 or
        512/1024 in bf16; v5e/v6e (128 MiB) can go ~2x larger.
    """
    B, D = x.shape
    C, D2 = W.shape
    assert D == D2, "feature dims of x and W must match"

    cdt = jnp.dtype(compute_dtype) if compute_dtype is not None else x.dtype

    tm = min(_round_up(tm, 8), _round_up(B, 8))
    tn = min(_round_up(tn, 128), _round_up(C, 128))
    Bp = _round_up(B, tm)
    Cp = _round_up(C, tn)

    # TODO(synk): D (the matmul K axis) is kept whole per block since the row
    # norms need full rows; for very large D add a K grid axis + pl.when(k==0)
    # accumulator after the norms are precomputed.
    x_c = x.astype(cdt)
    x_p = jnp.pad(x_c, ((0, Bp - B), (0, 0))) if Bp != B else x_c

    # Pad W once in its ORIGINAL dtype, take norms from that (full precision),
    # then cast to the MXU compute dtype for the main kernel.
    W_pad = jnp.pad(W, ((0, Cp - C), (0, 0))) if Cp != C else W
    inv_row = _compute_inv_norms(W_pad, tn, D)               # (1, Cp) f32
    W_p = W_pad.astype(cdt)

    grid = (Bp // tm, Cp // tn)
    isz = jnp.dtype(cdt).itemsize
    base_bytes = int(Bp * D * isz + grid[0] * Cp * D * isz
                     + Bp * Cp * isz + Cp * 4)

    x_spec = pl.BlockSpec((tm, D), lambda i, j: (i, 0))
    w_spec = pl.BlockSpec((tn, D), lambda i, j: (j, 0))
    inv_spec = pl.BlockSpec((1, tn), lambda i, j: (0, j))
    logits_spec = pl.BlockSpec((tm, tn), lambda i, j: (i, j))

    if y is None:
        logits = pl.pallas_call(
            _infer_kernel,
            out_shape=jax.ShapeDtypeStruct((Bp, Cp), cdt),
            grid=grid,
            in_specs=[x_spec, w_spec, inv_spec],
            out_specs=logits_spec,
            compiler_params=pltpu.CompilerParams(
                dimension_semantics=("parallel", "parallel"),
                vmem_limit_bytes=vmem_limit_bytes),
            cost_estimate=pl.CostEstimate(
                flops=2 * Bp * Cp * D, transcendentals=0,
                bytes_accessed=base_bytes),
        )(x_p, W_p, inv_row)
        return logits[:B, :C], s

    y2 = y.astype(jnp.int32).reshape(B, 1)
    y_p = jnp.pad(y2, ((0, Bp - B), (0, 0))) if Bp != B else y2
    s_arr = jnp.asarray(s, jnp.float32).reshape(1, 1)

    logits, bexp_rows, tgt_logits = pl.pallas_call(
        _make_train_kernel(tn, C, Cp),
        out_shape=(
            jax.ShapeDtypeStruct((Bp, Cp), cdt),             # raw cosine logits
            jax.ShapeDtypeStruct((Bp, 1), jnp.float32),      # non-target exp sums
            jax.ShapeDtypeStruct((Bp, 1), jnp.float32),      # target-class logit
        ),
        grid=grid,
        in_specs=[x_spec, w_spec, inv_spec,
                  pl.BlockSpec((tm, 1), lambda i, j: (i, 0)),
                  pl.BlockSpec(memory_space=pltpu.MemorySpace.SMEM)],
        out_specs=(logits_spec,
                   pl.BlockSpec((tm, 1), lambda i, j: (i, 0)),
                   pl.BlockSpec((tm, 1), lambda i, j: (i, 0))),
        compiler_params=pltpu.CompilerParams(
            dimension_semantics=("parallel", "arbitrary"),
            vmem_limit_bytes=vmem_limit_bytes),
        cost_estimate=pl.CostEstimate(
            flops=2 * Bp * Cp * D, transcendentals=Bp * Cp,
            bytes_accessed=base_bytes + Bp * (4 + 4 + 4)),
    )(x_p, W_p, inv_row, y_p, s_arr)

    # "with torch.no_grad()" scalar statistics -> new scale s (O(B) glue).
    b_avg = jnp.sum(bexp_rows[:B, 0]) / B
    theta_tgt = jnp.arccos(jnp.clip(tgt_logits[:B, 0], -1.0 + 1e-7, 1.0 - 1e-7))
    # torch.median returns the LOWER of the two middle values for even counts.
    theta_med = jnp.sort(theta_tgt)[(B - 1) // 2]
    s_new = jnp.log(b_avg) / jnp.cos(
        jnp.minimum(jnp.float32(math.pi / 4.0), theta_med))

    # Final rescale left to XLA (memory-bound elementwise; fuses downstream).
    out = s_new * logits[:B, :C].astype(jnp.float32)
    return out, s_new


def adacos_reference(x, W, s, y=None):
    """Pure-JAX replica of the PyTorch module, for verification."""
    wn = W / jnp.maximum(jnp.linalg.norm(W, axis=1, keepdims=True), 1e-12)
    logits = x @ wn.T
    if y is None:
        return logits, s
    theta = jnp.arccos(jnp.clip(logits, -1.0 + 1e-7, 1.0 - 1e-7))
    one_hot = jax.nn.one_hot(y, W.shape[0], dtype=logits.dtype)
    b_avg = jnp.sum(jnp.where(one_hot < 1, jnp.exp(s * logits), 0.0)) / x.shape[0]
    theta_t = theta[jnp.arange(x.shape[0]), y]
    theta_med = jnp.sort(theta_t)[(x.shape[0] - 1) // 2]
    s_new = jnp.log(b_avg) / jnp.cos(
        jnp.minimum(jnp.float32(math.pi / 4.0), theta_med))
    return s_new * logits, s_new


if __name__ == "__main__":
    key = jax.random.PRNGKey(0)
    k_w, k_x, k_y, k_w2, k_x2, k_y2 = jax.random.split(key, 6)

    # --- case 1: tiny single-tile shapes ------------------------------------
    B, D, C = 8, 32, 16
    bound = math.sqrt(6.0 / (D + C))     # xavier_uniform_ (fan_in=D, fan_out=C)
    W = jax.random.uniform(k_w, (C, D), jnp.float32, -bound, bound)
    x = jax.random.normal(k_x, (B, D), jnp.float32)
    y = jax.random.randint(k_y, (B,), 0, C)
    s0 = jnp.float32(math.sqrt(2.0) * math.log(C - 1))

    out, s_new = adacos_forward(x, W, s0, y)
    out = jax.block_until_ready(out)
    logits_inf, _ = adacos_forward(x, W, s0, None)
    logits_inf = jax.block_until_ready(logits_inf)

    out_ref, s_ref = adacos_reference(x, W, s0, y)
    logits_ref, _ = adacos_reference(x, W, s0, None)
    assert out.shape == (B, C) and logits_inf.shape == (B, C)
    assert jnp.allclose(out, out_ref, rtol=2e-4, atol=2e-4), "train path mismatch"
    assert jnp.allclose(s_new, s_ref, rtol=2e-4, atol=2e-4), "scale s mismatch"
    assert jnp.allclose(logits_inf, logits_ref, rtol=2e-4, atol=2e-4), "infer mismatch"

    # --- case 2: multi-tile grid (class-axis accumulation + padded classes) --
    B2, D2, C2 = 24, 48, 260
    bound2 = math.sqrt(6.0 / (D2 + C2))
    W2 = jax.random.uniform(k_w2, (C2, D2), jnp.float32, -bound2, bound2)
    x2 = jax.random.normal(k_x2, (B2, D2), jnp.float32)
    y2 = jax.random.randint(k_y2, (B2,), 0, C2)
    s02 = jnp.float32(math.sqrt(2.0) * math.log(C2 - 1))

    out2, s2 = adacos_forward(x2, W2, s02, y2, tm=8, tn=128)
    out2 = jax.block_until_ready(out2)
    out2_ref, s2_ref = adacos_reference(x2, W2, s02, y2)
    assert jnp.allclose(out2, out2_ref, rtol=2e-4, atol=2e-4), "multi-tile mismatch"
    assert jnp.allclose(s2, s2_ref, rtol=2e-4, atol=2e-4), "multi-tile s mismatch"

    # --- case 3: bf16 MXU operands (production path) -- smoke check ----------
    out_bf, s_bf = adacos_forward(x, W, s0, y, compute_dtype=jnp.bfloat16)
    out_bf = jax.block_until_ready(out_bf)
    assert out_bf.shape == (B, C)
    assert bool(jnp.all(jnp.isfinite(out_bf))) and bool(jnp.isfinite(s_bf))

    print("KERNEL_OK")
</pallas_src>

<mosaic_0001>
module attributes {stable_mosaic.version = 11 : i64} {
  func.func @_invnorm_kernel(%arg0: i32, %arg1: memref<128x32xf32, #tpu.memory_space<vmem>>, %arg2: memref<128x1xf32, #tpu.memory_space<vmem>>) attributes {dimension_semantics = [#tpu.dimension_semantics<parallel>], iteration_bounds = array<i64: 1>, scalar_prefetch = 0 : i64, scratch_operands = 0 : i64, tpu.core_type = #tpu.core_type<tc>, window_params = [{transform_indices = @transform_0, window_bounds = array<i64: 128, 32>}, {transform_indices = @transform_1, window_bounds = array<i64: 128, 1>}]} {
    %c0 = arith.constant 0 : index
    %c0_0 = arith.constant 0 : index
    %0 = vector.load %arg1[%c0, %c0_0] : memref<128x32xf32, #tpu.memory_space<vmem>>, vector<128x32xf32>
    %1 = arith.mulf %0, %0 : vector<128x32xf32>
    %cst = arith.constant dense<0.000000e+00> : vector<128xf32>
    %2 = vector.multi_reduction <add>, %1, %cst [1] : vector<128x32xf32> to vector<128xf32>
    %3 = vector.shape_cast %2 : vector<128xf32> to vector<128x1xf32>
    %cst_1 = arith.constant 1.000000e-24 : f32
    %4 = vector.broadcast %cst_1 : f32 to vector<128x1xf32>
    %5 = arith.maximumf %3, %4 : vector<128x1xf32>
    %6 = math.rsqrt %5 : vector<128x1xf32>
    %c0_2 = arith.constant 0 : index
    %c0_3 = arith.constant 0 : index
    %7 = vector.load %arg2[%c0_2, %c0_3] : memref<128x1xf32, #tpu.memory_space<vmem>>, vector<128x1xf32>
    tpu.vector_store %arg2[%c0_2, %c0_3], %6 {strides = array<i32>} : memref<128x1xf32, #tpu.memory_space<vmem>>, vector<128x1xf32>,
    return
  }
  func.func @transform_0(%arg0: i32) -> (i32, i32) {
    %c0_i32 = arith.constant 0 : i32
    %c0_i32_0 = arith.constant 0 : i32
    return %arg0, %c0_i32 : i32, i32
  }
  func.func @transform_1(%arg0: i32) -> (i32, i32) {
    %c0_i32 = arith.constant 0 : i32
    %c0_i32_0 = arith.constant 0 : i32
    return %arg0, %c0_i32 : i32, i32
  }
}

</mosaic_0001>

<bundles_post_ra>
// kernel: tpu_custom_call.1
= control target key start
LH: loop header
LB: loop body
LE: loop exit
PB: predicated region body
PF: predicated region fallthrough
CT: control target
= control target key end

     0   :  { %vm40_vm0 = vcmask 261120   ;;  %vm121_vm1 = vcmask 7168   ;;  %s312_s0 = inlined_call_operand.vmem [shape: f32[128,32], index: 0, kind: input, shape index: {}]   ;;  %s313_s1 = inlined_call_operand.vmem [shape: f32[128,1], index: 1, kind: output, shape index: {}]  }
   0x1   :  { %v10_v0 = vld [vmem:[%s312_s0 + $0x10] sm:$0xff]  ;;  %v8_v1 = vld [vmem:[%s312_s0] sm:$0xff]  ;;  %v11_v2 = vld [vmem:[%s312_s0 + $0x18] sm:$0xff] }
   0x2   :  { %v26_v3 = vmul.f32 %v10_v0, %v10_v0  ;;  %v24_v4 = vmul.f32 %v8_v1, %v8_v1  ;;  %v27_v5 = vmul.f32 %v11_v2, %v11_v2  ;;  %v9_v6 = vld [vmem:[%s312_s0 + $0x8] sm:$0xff]  ;;  %v12_v9 = vld [vmem:[%s312_s0 + $0x20] sm:$0xff]  ;;  %v15_v16 = vld [vmem:[%s312_s0 + $0x38] sm:$0xff] }
   0x3   :  { %v25_v7 = vmul.f32 %v9_v6, %v9_v6  ;;  %v13_v8 = vld [vmem:[%s312_s0 + $0x28] sm:$0xff]  ;;  %v28_v15 = vmul.f32 %v12_v9, %v12_v9  ;;  %v14_v17 = vld [vmem:[%s312_s0 + $0x30] sm:$0xff]  ;;  %v31_v20 = vmul.f32 %v15_v16, %v15_v16  ;;  %v16_v23 = vld [vmem:[%s312_s0 + $0x40] sm:$0xff] }
   0x4   :  { %v47_v10 = vsel %vm40_vm0, %v26_v3, 0.0  ;;  %v41_v11 = vsel %vm40_vm0, %v24_v4, 0.0  ;;  %v50_v12 = vsel %vm40_vm0, %v27_v5, 0.0  ;;  %v29_v14 = vmul.f32 %v13_v8, %v13_v8  ;;  %v17_v22 = vld [vmem:[%s312_s0 + $0x48] sm:$0xff]  ;;  %v19_v28 = vld [vmem:[%s312_s0 + $0x58] sm:$0xff]  ;;  %v18_v29 = vld [vmem:[%s312_s0 + $0x50] sm:$0xff] }
   0x5   :  { %48 = vadd.xlane.f32.xlu1 %v47_v10  ;;  %42 = vadd.xlane.f32.xlu0 %v41_v11  ;;  %v44_v13 = vsel %vm40_vm0, %v25_v7, 0.0  ;;  %v53_v19 = vsel %vm40_vm0, %v28_v15, 0.0  ;;  %v30_v21 = vmul.f32 %v14_v17, %v14_v17  ;;  %v62_v24 = vsel %vm40_vm0, %v31_v20, 0.0  ;;  %v21_v34 = vld [vmem:[%s312_s0 + $0x68] sm:$0xff]  ;;  %v20_v35 = vld [vmem:[%s312_s0 + $0x60] sm:$0xff]  ;;  %v23_v40 = vld [vmem:[%s312_s0 + $0x78] sm:$0xff] }
   0x6   :  { %v56_v18 = vsel %vm40_vm0, %v29_v14, 0.0  ;;  %v33_v26 = vmul.f32 %v17_v22, %v17_v22  ;;  %v32_v27 = vmul.f32 %v16_v23, %v16_v23  ;;  %v35_v32 = vmul.f32 %v19_v28, %v19_v28  ;;  %v22_v41 = vld [vmem:[%s312_s0 + $0x70] sm:$0xff] }
   0x7   :  { %v59_v25 = vsel %vm40_vm0, %v30_v21, 0.0  ;;  %v34_v33 = vmul.f32 %v18_v29, %v18_v29  ;;  %v37_v38 = vmul.f32 %v21_v34, %v21_v34  ;;  %v36_v39 = vmul.f32 %v20_v35, %v20_v35 }
   0x8   :  { %v68_v30 = vsel %vm40_vm0, %v33_v26, 0.0  ;;  %v65_v31 = vsel %vm40_vm0, %v32_v27, 0.0  ;;  %v74_v36 = vsel %vm40_vm0, %v35_v32, 0.0  ;;  %v39_v44 = vmul.f32 %v23_v40, %v23_v40 }
   0x9   :  { %51 = vadd.xlane.f32.xlu1 %v50_v12  ;;  %45 = vadd.xlane.f32.xlu0 %v44_v13  ;;  %v71_v37 = vsel %vm40_vm0, %v34_v33, 0.0  ;;  %v80_v42 = vsel %vm40_vm0, %v37_v38, 0.0  ;;  %v77_v43 = vsel %vm40_vm0, %v36_v39, 0.0  ;;  %v38_v45 = vmul.f32 %v22_v41, %v22_v41 }
   0xa   :  { %v86_v46 = vsel %vm40_vm0, %v39_v44, 0.0 }
   0xb   :  { %v83_v47 = vsel %vm40_vm0, %v38_v45, 0.0 }
   0xd   :  { %57 = vadd.xlane.f32.xlu1 %v56_v18  ;;  %54 = vadd.xlane.f32.xlu0 %v53_v19 }
  0x11   :  { %63 = vadd.xlane.f32.xlu1 %v62_v24  ;;  %60 = vadd.xlane.f32.xlu0 %v59_v25 }
  0x15   :  { %69 = vadd.xlane.f32.xlu1 %v68_v30  ;;  %66 = vadd.xlane.f32.xlu0 %v65_v31 }
  0x19   :  { %75 = vadd.xlane.f32.xlu1 %v74_v36  ;;  %72 = vadd.xlane.f32.xlu0 %v71_v37 }
  0x1d   :  { %81 = vadd.xlane.f32.xlu1 %v80_v42  ;;  %78 = vadd.xlane.f32.xlu0 %v77_v43 }
  0x21   :  { %87 = vadd.xlane.f32.xlu1 %v86_v46  ;;  %84 = vadd.xlane.f32.xlu0 %v83_v47 }
  0x92   :  { %v49_v48 = vpop.xlane.xlu1 %48  ;;  %v43_v49 = vpop.xlane.xlu0 %42 }
  0x93   :  { %v91_v50 = vmax.f32 %v49_v48, 1e-24  ;;  %v89_v51 = vmax.f32 %v43_v49, 1e-24 }
  0x95   :  { %142 = vrsqrt.f32 %v91_v50 }
  0x96   :  { %144 = vrsqrt.f32 %v89_v51  ;;  %v52_v52 = vpop.xlane.xlu1 %51  ;;  %v46_v53 = vpop.xlane.xlu0 %45 }
  0x97   :  { %v92_v54 = vmax.f32 %v52_v52, 1e-24  ;;  %v90_v55 = vmax.f32 %v46_v53, 1e-24 }
  0x99   :  { %146 = vrsqrt.f32 %v92_v54 }
  0x9a   :  { %148 = vrsqrt.f32 %v90_v55  ;;  %v58_v56 = vpop.xlane.xlu1 %57  ;;  %v55_v57 = vpop.xlane.xlu0 %54 }
  0x9b   :  { %v94_v58 = vmax.f32 %v58_v56, 1e-24  ;;  %v93_v59 = vmax.f32 %v55_v57, 1e-24 }
  0x9d   :  { %150 = vrsqrt.f32 %v94_v58 }
  0x9e   :  { %152 = vrsqrt.f32 %v93_v59  ;;  %v64_v60 = vpop.xlane.xlu1 %63  ;;  %v61_v61 = vpop.xlane.xlu0 %60 }
  0x9f   :  { %v143_v62 = vpop.eup %142  ;;  %v96_v63 = vmax.f32 %v64_v60, 1e-24  ;;  %v95_v0 = vmax.f32 %v61_v61, 1e-24 }
  0xa0   :  { %v145_v1 = vpop.eup %144  ;;  %124 = vst.msk [vmem:[%s313_s1 + $0x10] sm:$0xff] %vm121_vm1, %v143_v62 }
  0xa1   :  { %122 = vst.msk [vmem:[%s313_s1] sm:$0xff] %vm121_vm1, %v145_v1  ;;  %154 = vrsqrt.f32 %v96_v63 }
  0xa2   :  { %156 = vrsqrt.f32 %v95_v0  ;;  %v70_v2 = vpop.xlane.xlu1 %69  ;;  %v67_v3 = vpop.xlane.xlu0 %66 }
  0xa3   :  { %v147_v4 = vpop.eup %146  ;;  %v98_v5 = vmax.f32 %v70_v2, 1e-24  ;;  %v97_v6 = vmax.f32 %v67_v3, 1e-24 }
  0xa4   :  { %v149_v7 = vpop.eup %148  ;;  %125 = vst.msk [vmem:[%s313_s1 + $0x18] sm:$0xff] %vm121_vm1, %v147_v4 }
  0xa5   :  { %123 = vst.msk [vmem:[%s313_s1 + $0x8] sm:$0xff] %vm121_vm1, %v149_v7  ;;  %158 = vrsqrt.f32 %v98_v5 }
  0xa6   :  { %160 = vrsqrt.f32 %v97_v6  ;;  %v76_v8 = vpop.xlane.xlu1 %75  ;;  %v73_v9 = vpop.xlane.xlu0 %72 }
  0xa7   :  { %v151_v10 = vpop.eup %150  ;;  %v100_v11 = vmax.f32 %v76_v8, 1e-24  ;;  %v99_v12 = vmax.f32 %v73_v9, 1e-24 }
  0xa8   :  { %v153_v13 = vpop.eup %152  ;;  %127 = vst.msk [vmem:[%s313_s1 + $0x28] sm:$0xff] %vm121_vm1, %v151_v10 }
  0xa9   :  { %126 = vst.msk [vmem:[%s313_s1 + $0x20] sm:$0xff] %vm121_vm1, %v153_v13  ;;  %162 = vrsqrt.f32 %v100_v11 }
  0xaa   :  { %164 = vrsqrt.f32 %v99_v12  ;;  %v82_v14 = vpop.xlane.xlu1 %81  ;;  %v79_v15 = vpop.xlane.xlu0 %78 }
  0xab   :  { %v155_v16 = vpop.eup %154  ;;  %v102_v17 = vmax.f32 %v82_v14, 1e-24  ;;  %v101_v18 = vmax.f32 %v79_v15, 1e-24 }
  0xac   :  { %v157_v19 = vpop.eup %156  ;;  %129 = vst.msk [vmem:[%s313_s1 + $0x38] sm:$0xff] %vm121_vm1, %v155_v16 }
  0xad   :  { %128 = vst.msk [vmem:[%s313_s1 + $0x30] sm:$0xff] %vm121_vm1, %v157_v19  ;;  %166 = vrsqrt.f32 %v102_v17 }
  0xae   :  { %168 = vrsqrt.f32 %v101_v18  ;;  %v88_v20 = vpop.xlane.xlu1 %87  ;;  %v85_v21 = vpop.xlane.xlu0 %84 }
  0xaf   :  { %v159_v22 = vpop.eup %158  ;;  %v104_v23 = vmax.f32 %v88_v20, 1e-24  ;;  %v103_v24 = vmax.f32 %v85_v21, 1e-24 }
  0xb0   :  { %v161_v25 = vpop.eup %160  ;;  %131 = vst.msk [vmem:[%s313_s1 + $0x48] sm:$0xff] %vm121_vm1, %v159_v22 }
  0xb1   :  { %130 = vst.msk [vmem:[%s313_s1 + $0x40] sm:$0xff] %vm121_vm1, %v161_v25  ;;  %170 = vrsqrt.f32 %v104_v23 }
  0xb2   :  { %172 = vrsqrt.f32 %v103_v24 }
  0xb3   :  { %v163_v26 = vpop.eup %162 }
  0xb4   :  { %v165_v27 = vpop.eup %164  ;;  %133 = vst.msk [vmem:[%s313_s1 + $0x58] sm:$0xff] %vm121_vm1, %v163_v26 }
  0xb5   :  { %132 = vst.msk [vmem:[%s313_s1 + $0x50] sm:$0xff] %vm121_vm1, %v165_v27 }
  0xb7   :  { %v167_v28 = vpop.eup %166 }
  0xb8   :  { %v169_v29 = vpop.eup %168  ;;  %135 = vst.msk [vmem:[%s313_s1 + $0x68] sm:$0xff] %vm121_vm1, %v167_v28 }
  0xb9   :  { %134 = vst.msk [vmem:[%s313_s1 + $0x60] sm:$0xff] %vm121_vm1, %v169_v29 }
  0xbb   :  { %v171_v30 = vpop.eup %170 }
  0xbc   :  { %v173_v31 = vpop.eup %172  ;;  %137 = vst.msk [vmem:[%s313_s1 + $0x78] sm:$0xff] %vm121_vm1, %v171_v30 }
  0xbd   :  { %136 = vst.msk [vmem:[%s313_s1 + $0x70] sm:$0xff] %vm121_vm1, %v173_v31 }

</bundles_post_ra>
